<compile_context>
chip_gen: v6e
topology: v6e:2x2x1
jax: 0.10.0
libtpu: 0.0.40
codegen_flags: <defaults>
</compile_context>

<pallas_src>
import jax
import jax.numpy as jnp
from jax.experimental import pallas as pl
from jax.experimental.pallas import tpu as pltpu

LANES = 128


def _round_up(n, m):
    return ((n + m - 1) // m) * m


def critic_kernel(x_ref, w_ref, v_ref, out_ref):
    # x_ref: [B, P]  f32   s in lanes [:ns], a in lanes [ns:ns+na], zeros elsewhere
    # w_ref: [P, 4P] bf16  cols [0:P]=W1, [P:2P]=W2a, [2P:3P]=W2h, [3P:4P]=W3
    #                      (all zero-padded, stored [in, out])
    # v_ref: [8, P]  f32   rows 0-2: b1,b2,b3 (zero-padded); row 3: b4 broadcast
    #                      across all lanes; row 4: fc4 weight row; 5-7 unused
    P = x_ref.shape[1]
    x = x_ref[...].astype(jnp.bfloat16)

    # Fused fc1 / fc2-action pass: one 2P-wide MXU pass on x.
    #   lanes [:P]  -> x @ W1   (fc1 pre-activation)
    #   lanes [P:]  -> x @ W2a  (the `a` half of cat([h1, a]) @ W2)
    t = jnp.dot(x, w_ref[:, : 2 * P], preferred_element_type=jnp.float32)

    # fc1 + relu   (padded lanes stay exactly 0: padded w cols & bias lanes are 0)
    h1 = jnp.maximum(t[:, :P] + v_ref[0:1, :], 0.0)

    # fc2(cat([h1, a])) + relu   -> h1 @ W2h + x @ W2a + b2
    h2 = jnp.maximum(
        jnp.dot(h1.astype(jnp.bfloat16), w_ref[:, 2 * P : 3 * P],
                preferred_element_type=jnp.float32)
        + t[:, P:]
        + v_ref[1:2, :],
        0.0)

    # fc3 + relu
    h3 = jnp.maximum(
        jnp.dot(h2.astype(jnp.bfloat16), w_ref[:, 3 * P : 4 * P],
                preferred_element_type=jnp.float32)
        + v_ref[2:3, :],
        0.0)

    # fc4: single-output projection on VPU (mul) + XLU (lane reduce) instead of
    # paying a full MXU push/pop for one useful output column.
    q = jnp.sum(h3 * v_ref[4:5, :], axis=-1, keepdims=True)      # [B, 1] f32

    # Lane-dense store: every lane carries Q (wrapper slices column 0).
    out_ref[...] = q + v_ref[3:4, :]


def init_raw_params(key, nb_states, nb_actions, hidden1=64, hidden2=64, hidden3=64):
    """nn.Linear-style init: U(-1/sqrt(fan_in), 1/sqrt(fan_in)). Weights stored [in, out]."""
    ks = jax.random.split(key, 8)

    def lin(kw, kb, fan_in, fan_out):
        bound = 1.0 / float(fan_in) ** 0.5
        w = jax.random.uniform(kw, (fan_in, fan_out), jnp.float32, -bound, bound)
        b = jax.random.uniform(kb, (fan_out,), jnp.float32, -bound, bound)
        return w, b

    w1, b1 = lin(ks[0], ks[1], nb_states, hidden1)
    w2, b2 = lin(ks[2], ks[3], hidden1 + nb_actions, hidden2)
    w3, b3 = lin(ks[4], ks[5], hidden2, hidden3)
    w4, b4 = lin(ks[6], ks[7], hidden3, 1)
    return dict(w1=w1, b1=b1, w2=w2, b2=b2, w3=w3, b3=b3, w4=w4, b4=b4)


def pack_params(raw, nb_states, nb_actions):
    """Zero-pad to the 128-lane width and pack into 2 kernel operands.

    Returns:
      wpack: [P, 4P] bfloat16 -- cols [0:P]=W1, [P:2P]=W2a, [2P:3P]=W2h, [3P:4P]=W3
      v:     [8, P]  float32  -- biases + fc4 row (see kernel docstring)
    """
    ns, na = nb_states, nb_actions
    h1 = raw["w1"].shape[1]
    h2 = raw["w3"].shape[0]
    h3 = raw["w3"].shape[1]
    P = _round_up(max(ns + na, h1, h2, h3, LANES), LANES)

    w1p = jnp.zeros((P, P), jnp.float32).at[:ns, :h1].set(raw["w1"])
    w2ap = jnp.zeros((P, P), jnp.float32).at[ns:ns + na, :h2].set(raw["w2"][h1:])
    w2hp = jnp.zeros((P, P), jnp.float32).at[:h1, :h2].set(raw["w2"][:h1])
    w3p = jnp.zeros((P, P), jnp.float32).at[:h2, :h3].set(raw["w3"])
    # One lane-dense bf16 weight slab: [P, 4P]
    wpack = jnp.concatenate([w1p, w2ap, w2hp, w3p], axis=1).astype(jnp.bfloat16)

    v = jnp.zeros((8, P), jnp.float32)
    v = v.at[0, :h1].set(raw["b1"])
    v = v.at[1, :h2].set(raw["b2"])
    v = v.at[2, :h3].set(raw["b3"])
    v = v.at[3, :].set(raw["b4"][0])                  # b4 broadcast across lanes
    v = v.at[4, :h3].set(raw["w4"][:, 0])             # fc4 weight row
    return wpack, v


@jax.jit
def critic_forward(s, a, wpack, vstack):
    """s: [B, nb_states], a: [B, nb_actions] -> Q: [B, 1] float32."""
    B = s.shape[0]
    ns, na = s.shape[1], a.shape[1]
    P = wpack.shape[0]

    # Pack s || a into one lane-dense [B, P] input (single operand DMA).
    # TODO(synk): at large B assemble this inside the kernel from separate
    # full-block s/a operands to avoid the extra [B,P] HBM round-trip.
    x = jnp.zeros((B, P), jnp.float32)
    x = x.at[:, :ns].set(s.astype(jnp.float32))
    x = x.at[:, ns:ns + na].set(a.astype(jnp.float32))

    vmem = pl.BlockSpec(memory_space=pltpu.MemorySpace.VMEM)
    # flops: one [B,P]x[P,2P] dot + two [B,P]x[P,P] dots + final VPU projection
    flops = 2 * B * P * (2 * P) + 2 * (2 * B * P * P) + 2 * B * P
    bytes_accessed = (4 * B * P          # x (f32 in)
                      + 2 * P * 4 * P    # weights (bf16)
                      + 4 * 8 * P        # bias/vector pack (f32)
                      + 4 * B * P)       # output slab (f32)

    out = pl.pallas_call(
        critic_kernel,
        out_shape=jax.ShapeDtypeStruct((B, P), jnp.float32),
        in_specs=[vmem, vmem, vmem],
        out_specs=vmem,
        cost_estimate=pl.CostEstimate(
            flops=flops, transcendentals=0, bytes_accessed=bytes_accessed),
    )(x, wpack, vstack)
    return out[:, :1]


def critic_reference(s, a, raw):
    """Pure-JAX f32 reference matching the PyTorch forward exactly."""
    h1 = jax.nn.relu(s @ raw["w1"] + raw["b1"])
    h2 = jax.nn.relu(jnp.concatenate([h1, a], axis=1) @ raw["w2"] + raw["b2"])
    h3 = jax.nn.relu(h2 @ raw["w3"] + raw["b3"])
    return h3 @ raw["w4"] + raw["b4"]


if __name__ == "__main__":
    nb_states, nb_actions = 16, 4
    B = 8

    key = jax.random.PRNGKey(0)
    k_s, k_a, k_p = jax.random.split(key, 3)
    s = jax.random.normal(k_s, (B, nb_states), jnp.float32)
    a = jax.random.normal(k_a, (B, nb_actions), jnp.float32)

    raw = init_raw_params(k_p, nb_states, nb_actions)
    wpack, vstack = pack_params(raw, nb_states, nb_actions)

    out = jax.block_until_ready(critic_forward(s, a, wpack, vstack))
    ref = critic_reference(s, a, raw)

    assert out.shape == (B, 1), out.shape
    # Tolerance relaxed vs. pure-f32: weights & activations go through bf16 on
    # the MXU path (f32 accumulation), so expect ~1e-2-level deviations.
    assert jnp.allclose(out, ref, atol=5e-2, rtol=5e-2), (out, ref)

    print("KERNEL_OK")
</pallas_src>

<mosaic_0001>
module attributes {stable_mosaic.version = 11 : i64} {
  func.func @critic_kernel(%arg0: memref<8x128xf32, #tpu.memory_space<vmem>>, %arg1: memref<128x512xbf16, #tpu.memory_space<vmem>>, %arg2: memref<8x128xf32, #tpu.memory_space<vmem>>, %arg3: memref<8x128xf32, #tpu.memory_space<vmem>>) attributes {dimension_semantics = [], scalar_prefetch = 0 : i64, scratch_operands = 0 : i64, tpu.core_type = #tpu.core_type<tc>} {
    %c0 = arith.constant 0 : index
    %c0_0 = arith.constant 0 : index
    %0 = vector.load %arg0[%c0, %c0_0] : memref<8x128xf32, #tpu.memory_space<vmem>>, vector<8x128xf32>
    %1 = arith.truncf %0 : vector<8x128xf32> to vector<8x128xbf16>
    %c0_1 = arith.constant 0 : index
    %c0_2 = arith.constant 0 : index
    %2 = vector.load %arg1[%c0_1, %c0_2] : memref<128x512xbf16, #tpu.memory_space<vmem>>, vector<128x256xbf16>
    %cst = arith.constant dense<0.000000e+00> : vector<8x256xf32>
    %3 = tpu.matmul %1, %2, %cst {dimension_numbers = #tpu.dot_dimension_numbers<[1], [0], [0], [1], [0, 0, 1, 1], [], []>} : vector<8x128xbf16>, vector<128x256xbf16>, vector<8x256xf32> -> vector<8x256xf32>
    %4 = vector.extract_strided_slice %3 {offsets = [0, 0], sizes = [8, 128], strides = [1, 1]} : vector<8x256xf32> to vector<8x128xf32>
    %c0_3 = arith.constant 0 : index
    %c0_4 = arith.constant 0 : index
    %5 = vector.load %arg2[%c0_3, %c0_4] : memref<8x128xf32, #tpu.memory_space<vmem>>, vector<1x128xf32>
    %6 = vector.broadcast %5 : vector<1x128xf32> to vector<8x128xf32>
    %7 = arith.addf %4, %6 : vector<8x128xf32>
    %cst_5 = arith.constant 0.000000e+00 : f32
    %8 = vector.broadcast %cst_5 : f32 to vector<8x128xf32>
    %9 = arith.maximumf %7, %8 : vector<8x128xf32>
    %10 = arith.truncf %9 : vector<8x128xf32> to vector<8x128xbf16>
    %c0_6 = arith.constant 0 : index
    %c256 = arith.constant 256 : index
    %11 = vector.load %arg1[%c0_6, %c256] : memref<128x512xbf16, #tpu.memory_space<vmem>>, vector<128x128xbf16>
    %cst_7 = arith.constant dense<0.000000e+00> : vector<8x128xf32>
    %12 = tpu.matmul %10, %11, %cst_7 {dimension_numbers = #tpu.dot_dimension_numbers<[1], [0], [0], [1], [0, 0, 1, 1], [], []>} : vector<8x128xbf16>, vector<128x128xbf16>, vector<8x128xf32> -> vector<8x128xf32>
    %13 = vector.extract_strided_slice %3 {offsets = [0, 128], sizes = [8, 128], strides = [1, 1]} : vector<8x256xf32> to vector<8x128xf32>
    %14 = arith.addf %12, %13 : vector<8x128xf32>
    %c1 = arith.constant 1 : index
    %c0_8 = arith.constant 0 : index
    %15 = vector.load %arg2[%c1, %c0_8] : memref<8x128xf32, #tpu.memory_space<vmem>>, vector<1x128xf32>
    %16 = vector.broadcast %15 : vector<1x128xf32> to vector<8x128xf32>
    %17 = arith.addf %14, %16 : vector<8x128xf32>
    %cst_9 = arith.constant 0.000000e+00 : f32
    %18 = vector.broadcast %cst_9 : f32 to vector<8x128xf32>
    %19 = arith.maximumf %17, %18 : vector<8x128xf32>
    %20 = arith.truncf %19 : vector<8x128xf32> to vector<8x128xbf16>
    %c0_10 = arith.constant 0 : index
    %c384 = arith.constant 384 : index
    %21 = vector.load %arg1[%c0_10, %c384] : memref<128x512xbf16, #tpu.memory_space<vmem>>, vector<128x128xbf16>
    %cst_11 = arith.constant dense<0.000000e+00> : vector<8x128xf32>
    %22 = tpu.matmul %20, %21, %cst_11 {dimension_numbers = #tpu.dot_dimension_numbers<[1], [0], [0], [1], [0, 0, 1, 1], [], []>} : vector<8x128xbf16>, vector<128x128xbf16>, vector<8x128xf32> -> vector<8x128xf32>
    %c2 = arith.constant 2 : index
    %c0_12 = arith.constant 0 : index
    %23 = vector.load %arg2[%c2, %c0_12] : memref<8x128xf32, #tpu.memory_space<vmem>>, vector<1x128xf32>
    %24 = vector.broadcast %23 : vector<1x128xf32> to vector<8x128xf32>
    %25 = arith.addf %22, %24 : vector<8x128xf32>
    %cst_13 = arith.constant 0.000000e+00 : f32
    %26 = vector.broadcast %cst_13 : f32 to vector<8x128xf32>
    %27 = arith.maximumf %25, %26 : vector<8x128xf32>
    %c4 = arith.constant 4 : index
    %c0_14 = arith.constant 0 : index
    %28 = vector.load %arg2[%c4, %c0_14] : memref<8x128xf32, #tpu.memory_space<vmem>>, vector<1x128xf32>
    %29 = vector.broadcast %28 : vector<1x128xf32> to vector<8x128xf32>
    %30 = arith.mulf %27, %29 : vector<8x128xf32>
    %cst_15 = arith.constant dense<0.000000e+00> : vector<8xf32>
    %31 = vector.multi_reduction <add>, %30, %cst_15 [1] : vector<8x128xf32> to vector<8xf32>
    %32 = vector.shape_cast %31 : vector<8xf32> to vector<8x1xf32>
    %c3 = arith.constant 3 : index
    %c0_16 = arith.constant 0 : index
    %33 = vector.load %arg2[%c3, %c0_16] : memref<8x128xf32, #tpu.memory_space<vmem>>, vector<1x128xf32>
    %34 = vector.broadcast %32 : vector<8x1xf32> to vector<8x128xf32>
    %35 = vector.broadcast %33 : vector<1x128xf32> to vector<8x128xf32>
    %36 = arith.addf %34, %35 : vector<8x128xf32>
    %c0_17 = arith.constant 0 : index
    %c0_18 = arith.constant 0 : index
    %37 = vector.load %arg3[%c0_17, %c0_18] : memref<8x128xf32, #tpu.memory_space<vmem>>, vector<8x128xf32>
    tpu.vector_store %arg3[%c0_17, %c0_18], %36 {strides = array<i32>} : memref<8x128xf32, #tpu.memory_space<vmem>>, vector<8x128xf32>,
    return
  }
}

</mosaic_0001>

<bundles_post_ra>
// kernel: critic_forward.1
= control target key start
LH: loop header
LB: loop body
LE: loop exit
PB: predicated region body
PF: predicated region fallthrough
CT: control target
= control target key end

     0   :  { %8 = vsyncpa [#allocation3], 0  ;;  %s581_s12 = smov [#allocation2]   ;;  %s649_s0 = inlined_call_operand.vmem [shape: f32[8,128], index: 0, kind: input, shape index: {}]   ;;  %s650_s1 = inlined_call_operand.hbm [shape: bf16[128,512], index: 1, kind: input, shape index: {}]   ;;  %s651_s2 = inlined_call_operand.vmem [shape: f32[8,128], index: 2, kind: input, shape index: {}]   ;;  %s652_s3 = inlined_call_operand.vmem [shape: f32[8,128], index: 3, kind: output, shape index: {}]  }
   0x1   :  { %s16_s13 = sshll.u32 %s581_s12, 4  ;;  %s17_s13 = int_to_ptr.vmem [resolvable:$true] %s16_s13 }
   0x2   :  { %s567_s14 = scalar_lea.vmem %s17_s13, 4096  ;;  %p572_p1 = scmp.lt.s32.totalorder %s17_s13, %s17_s13 }
   0x3   :  { %p568_p0 = scmp.ne.s32.totalorder %s17_s13, %s567_s14  ;;  %p573_p2 = scmp.lt.s32.totalorder %s567_s14, %s567_s14 }
   0x5   :  { %p574_p3 = por %p573_p2, %p572_p1 }
   0x7   :  { %p575_p4 = pnand %p574_p3, %p568_p0 }
   0x9   :  { %578 = shalt.err (!%p575_p4)
}
   0xa   :  { %s582_s15 = smov 256   ;;  %s583_s16 = smov 16  }
   0xb   :  { %22 = dma.hbm_to_vmem [thread:$0]  %s650_s1, 4096, %s17_s13, [#allocation3], %s582_s15, %s582_s15, %s583_s16  }
   0xc   :  { %579 = dma.done.wait [#allocation3], 4096  }
   0xd   :  { %580 = vsyncadd [#allocation3], 4294963200  ;;  %v584_v0 = vmov 0   ;;  %v585_v1 = vmov 0.0   ;;  %v519_v2 = vld [vmem:[#allocation2 + $0xe4] ss:$16 sps:$4 sm:$0xff]  }
   0xe   :  { %159 = vmatprep.mubr.bf16.mxu0 %v584_v0  ;;  %473 = vmatprep.subr.bf16.mxu1 %v585_v1  ;;  %v521_v3 = vld [vmem:[#allocation2 + $0xe0] ss:$16 sps:$4 sm:$0xff]   ;;  %v522_v4 = vld [vmem:[#allocation2 + $0xc4] ss:$16 sps:$4 sm:$0xff]   ;;  %v543_v10 = vld [vmem:[#allocation2 + $0xe8] ss:$16 sps:$4 sm:$0xff]  }
   0xf   :  { %127 = vmatprep.subr.bf16.mxu0 %v519_v2  ;;  %v524_v5 = vld [vmem:[#allocation2 + $0xc0] ss:$16 sps:$4 sm:$0xff]   ;;  %v525_v6 = vld [vmem:[#allocation2 + $0xa4] ss:$16 sps:$4 sm:$0xff]   ;;  %474 = vmatpush3.bf16.msra.mxu1 %v543_v10  ;;  %v544_v12 = vld [vmem:[#allocation2 + $0xc8] ss:$16 sps:$4 sm:$0xff]  }
  0x10   :  { %128 = vmatpush1.bf16.msra.mxu0 %v521_v3  ;;  %v527_v7 = vld [vmem:[#allocation2 + $0xa0] ss:$16 sps:$4 sm:$0xff]   ;;  %v528_v8 = vld [vmem:[#allocation2 + $0x84] ss:$16 sps:$4 sm:$0xff]   ;;  %475 = vmatprep.subr.bf16.mxu1 %v585_v1  ;;  %v545_v15 = vld [vmem:[#allocation2 + $0xa8] ss:$16 sps:$4 sm:$0xff]  }
  0x11   :  { %129 = vmatprep.subr.bf16.mxu0 %v522_v4  ;;  %v530_v9 = vld [vmem:[#allocation2 + $0x80] ss:$16 sps:$4 sm:$0xff]   ;;  %v531_v11 = vld [vmem:[#allocation2 + $0x64] ss:$16 sps:$4 sm:$0xff]   ;;  %v546_v18 = vld [vmem:[#allocation2 + $0x88] ss:$16 sps:$4 sm:$0xff]  }
  0x12   :  { %v533_v13 = vld [vmem:[#allocation2 + $0x60] ss:$16 sps:$4 sm:$0xff]   ;;  %v534_v14 = vld [vmem:[#allocation2 + $0x44] ss:$16 sps:$4 sm:$0xff]   ;;  %v547_v21 = vld [vmem:[#allocation2 + $0x68] ss:$16 sps:$4 sm:$0xff]  }
  0x13   :  { %v536_v16 = vld [vmem:[#allocation2 + $0x40] ss:$16 sps:$4 sm:$0xff]   ;;  %476 = vmatpush3.bf16.msra.mxu1 %v544_v12  ;;  %v537_v17 = vld [vmem:[#allocation2 + $0x24] ss:$16 sps:$4 sm:$0xff]   ;;  %v548_v24 = vld [vmem:[#allocation2 + $0x48] ss:$16 sps:$4 sm:$0xff]  }
  0x14   :  { %130 = vmatpush1.bf16.msra.mxu0 %v524_v5  ;;  %477 = vmatprep.subr.bf16.mxu1 %v585_v1  ;;  %v539_v19 = vld [vmem:[#allocation2 + $0x20] ss:$16 sps:$4 sm:$0xff]   ;;  %v540_v20 = vld [vmem:[#allocation2 + $0x4] ss:$16 sps:$4 sm:$0xff]   ;;  %v549_v26 = vld [vmem:[#allocation2 + $0x28] ss:$16 sps:$4 sm:$0xff]  }
  0x15   :  { %131 = vmatprep.subr.bf16.mxu0 %v525_v6  ;;  %v542_v22 = vld [vmem:[#allocation2] ss:$16 sps:$4 sm:$0xff]   ;;  %v550_v27 = vld [vmem:[#allocation2 + $0x8] ss:$16 sps:$4 sm:$0xff]   ;;  %vm586_vm0 = vmmov 0  }
  0x16   :  { %v29_v23 = vld [vmem:[%s649_s0] sm:$0xff]  ;;  %489 = vmatprep.mubr.msk.bf16.mxu1 %vm586_vm0, %v585_v1  ;;  %v551_v28 = vld [vmem:[#allocation2 + $0xec] ss:$16 sps:$4 sm:$0xff]  }
  0x17   :  { %478 = vmatpush3.bf16.msra.mxu1 %v545_v15  ;;  %v30_v25 = vpack.c.bf16 %v29_v23, %v29_v23  ;;  %v552_v29 = vld [vmem:[#allocation2 + $0xcc] ss:$16 sps:$4 sm:$0xff]   ;;  %v434_v34 = vld [vmem:[%s651_s2] ss:$0 sm:$0xff]  ;;  %v443_v45 = vld [vmem:[%s651_s2 + $0x1] ss:$0 sm:$0xff] }
  0x18   :  { %132 = vmatpush1.bf16.msra.mxu0 %v527_v7  ;;  %479 = vmatprep.subr.bf16.mxu1 %v585_v1  ;;  %v553_v30 = vld [vmem:[#allocation2 + $0xac] ss:$16 sps:$4 sm:$0xff]   ;;  %v444_v53 = vld [vmem:[%s651_s2 + $0x2] ss:$0 sm:$0xff]  ;;  %v453_v57 = vld [vmem:[%s651_s2 + $0x4] ss:$0 sm:$0xff] }
  0x19   :  { %133 = vmatprep.subr.bf16.mxu0 %v528_v8  ;;  %v554_v31 = vld [vmem:[#allocation2 + $0x8c] ss:$16 sps:$4 sm:$0xff]   ;;  %v454_v62 = vld [vmem:[%s651_s2 + $0x3] ss:$0 sm:$0xff] }
  0x1a   :  { %v555_v32 = vld [vmem:[#allocation2 + $0x6c] ss:$16 sps:$4 sm:$0xff]  }
  0x1b   :  { %480 = vmatpush3.bf16.msra.mxu1 %v546_v18  ;;  %v556_v33 = vld [vmem:[#allocation2 + $0x4c] ss:$16 sps:$4 sm:$0xff]  }
  0x1c   :  { %134 = vmatpush1.bf16.msra.mxu0 %v530_v9  ;;  %481 = vmatprep.subr.bf16.mxu1 %v585_v1  ;;  %v557_v42 = vld [vmem:[#allocation2 + $0x2c] ss:$16 sps:$4 sm:$0xff]  }
  0x1d   :  { %135 = vmatprep.subr.bf16.mxu0 %v531_v11  ;;  %v558_v43 = vld [vmem:[#allocation2 + $0xc] ss:$16 sps:$4 sm:$0xff]  }
  0x1f   :  { %482 = vmatpush3.bf16.msra.mxu1 %v547_v21 }
  0x20   :  { %136 = vmatpush1.bf16.msra.mxu0 %v533_v13  ;;  %483 = vmatprep.subr.bf16.mxu1 %v585_v1 }
  0x21   :  { %137 = vmatprep.subr.bf16.mxu0 %v534_v14 }
  0x23   :  { %484 = vmatpush3.bf16.msra.mxu1 %v548_v24 }
  0x24   :  { %138 = vmatpush1.bf16.msra.mxu0 %v536_v16  ;;  %485 = vmatprep.subr.bf16.mxu1 %v585_v1 }
  0x25   :  { %139 = vmatprep.subr.bf16.mxu0 %v537_v17 }
  0x27   :  { %486 = vmatpush3.bf16.msra.mxu1 %v549_v26 }
  0x28   :  { %140 = vmatpush1.bf16.msra.mxu0 %v539_v19  ;;  %487 = vmatprep.subr.bf16.mxu1 %v585_v1 }
  0x29   :  { %141 = vmatprep.subr.bf16.mxu0 %v540_v20 }
  0x2b   :  { %488 = vmatpush3.bf16.msra.mxu1 %v550_v27 }
  0x2c   :  { %142 = vmatpush1.bf16.msra.mxu0 %v542_v22 }
  0x2d   :  { %493 = vmatprep.subr.bf16.mxu0 %v585_v1 }
  0x2f   :  { %160 = vmatmul.mubr.bf16.vlgmr.msra.gmra.mxu0 %v30_v25 }
  0x30   :  { %509 = vmatprep.mubr.msk.bf16.mxu0 %vm586_vm0, %v585_v1  ;;  %494 = vmatpush3.bf16.msra.mxu0 %v551_v28 }
  0x31   :  { %495 = vmatprep.subr.bf16.mxu0 %v585_v1 }
  0x34   :  { %496 = vmatpush3.bf16.msra.mxu0 %v552_v29 }
  0x35   :  { %497 = vmatprep.subr.bf16.mxu0 %v585_v1 }
  0x38   :  { %498 = vmatpush3.bf16.msra.mxu0 %v553_v30 }
  0x39   :  { %499 = vmatprep.subr.bf16.mxu0 %v585_v1 }
  0x3c   :  { %500 = vmatpush3.bf16.msra.mxu0 %v554_v31 }
  0x3d   :  { %501 = vmatprep.subr.bf16.mxu0 %v585_v1 }
  0x40   :  { %502 = vmatpush3.bf16.msra.mxu0 %v555_v32 }
  0x41   :  { %503 = vmatprep.subr.bf16.mxu0 %v585_v1 }
  0x44   :  { %504 = vmatpush3.bf16.msra.mxu0 %v556_v33 }
  0x45   :  { %505 = vmatprep.subr.bf16.mxu0 %v585_v1 }
  0x48   :  { %506 = vmatpush3.bf16.msra.mxu0 %v557_v42 }
  0x49   :  { %507 = vmatprep.subr.bf16.mxu0 %v585_v1 }
  0x4c   :  { %508 = vmatpush3.bf16.msra.mxu0 %v558_v43 }
  0xef   :  { %v161_v35 = vpop.f32.mrf.mxu0 }
  0xf0   :  { %v173_v36 = vadd.f32 %v434_v34, %v161_v35 }
  0xf1   :  { %v163_v37 = vpop.f32.mrf.mxu0 }
  0xf2   :  { %v174_v38 = vmax.f32 %v173_v36, 0.0 }
  0xf3   :  { %v165_v39 = vpop.f32.mrf.mxu0 }
  0xf4   :  { %v175_v40 = vpack.c.bf16 %v174_v38, %v174_v38 }
  0xf5   :  { %v166_v41 = vpop.f32.mrf.mxu0 }
  0xf6   :  { %490 = vmatmul.mubr.bf16.vlgmr.msra.gmra.mxu1 %v175_v40 }
 0x1b6   :  { %v274_v44 = vpop.f32.mrf.mxu1 }
 0x1b7   :  { %v275_v46 = vadd.f32 %v274_v44, %v163_v37 }
 0x1b8   :  { %v491_v47 = vpop.f32.mrf.mxu1 }
 0x1b9   :  { %v285_v48 = vadd.f32 %v443_v45, %v275_v46 }
 0x1ba   :  { %v277_v49 = vpop.f32.mrf.mxu1 }
 0x1bb   :  { %v286_v50 = vmax.f32 %v285_v48, 0.0 }
 0x1bc   :  { %v492_v51 = vpop.f32.mrf.mxu1 }
 0x1bd   :  { %v287_v52 = vpack.c.bf16 %v286_v50, %v286_v50 }
 0x1bf   :  { %510 = vmatmul.mubr.bf16.vlgmr.msra.gmra.mxu0 %v287_v52 }
 0x27f   :  { %v391_v54 = vpop.f32.mrf.mxu0 }
 0x280   :  { %v392_v55 = vadd.f32 %v444_v53, %v391_v54 }
 0x281   :  { %v511_v56 = vpop.f32.mrf.mxu0 }
 0x282   :  { %v397_v58 = vmax.f32 %v392_v55, 0.0 }
 0x283   :  { %v394_v59 = vpop.f32.mrf.mxu0 }
 0x284   :  { %v403_v60 = vmul.f32 %v453_v57, %v397_v58 }
 0x285   :  { %v512_v61 = vpop.f32.mrf.mxu0 }
 0x286   :  { %404 = vadd.xlane.f32.xlu0 %v403_v60 }
 0x30f   :  { %v405_v63 = vpop.xlane.xlu0 %404 }
 0x310   :  { %v411_v0 = vadd.f32 %v454_v62, %v405_v63 }
 0x312   :  { %412 = vst [vmem:[%s652_s3] sm:$0xff] %v411_v0 }
 0x313   :  { %417 = vsyncpa [#allocation3], 1 }

</bundles_post_ra>
